<compile_context>
chip_gen: v7x
topology: tpu7x:2x2x1
jax: 0.10.0
libtpu: 0.0.40
codegen_flags: <defaults>
</compile_context>

<pallas_src>
import jax
import jax.numpy as jnp
import numpy as np
from jax.experimental import pallas as pl
from jax.experimental.pallas import tpu as pltpu


def _round_up(x, m):
    return (x + m - 1) // m * m


def _cdiv(a, b):
    return -(-a // b)


def _pick_block(batch):
    """Rows per grid step: multiple of 8 sublanes; prefer full 128-row MXU
    M-tiles; cap at 512 (v7x VMEM budget); keep >= 2 grid steps for large
    batches (v7x has 2 TensorCores)."""
    if batch <= 128:
        return _round_up(batch, 8)
    n_blocks = max(2, _cdiv(batch, 512))
    return min(512, _round_up(_cdiv(batch, n_blocks), 128))


def pen_kernel(xw_ref, xh_ref, w1_ref, b1_ref, w2_ref, b2_ref,
               a_ref, c_ref, o_ref):
    nw, bt, wlen = xw_ref.shape
    # Windows were laid out window-major in the wrapper; merging the leading
    # two axes is sublane-contiguous, i.e. layout-free.
    xs = xw_ref[...].reshape(nw * bt, wlen)                        # (N*BT, d+1)

    # phi layers 1-2 (the only nonlinear part) as dense MXU contractions with
    # (batch, window) folded into the M dimension.
    h = jnp.dot(xs, w1_ref[...], preferred_element_type=jnp.float32) + b1_ref[...]
    h = jnp.maximum(h, 0.0)                                        # (N*BT, 100)
    h = jnp.dot(h, w2_ref[...], preferred_element_type=jnp.float32) + b2_ref[...]
    h = jnp.maximum(h, 0.0)                                        # (N*BT, 50)

    # Window sum BEFORE phi layer 3 (layer 3 is linear, folded into C below).
    # Rows i*BT .. (i+1)*BT-1 hold window i; slices are sublane-aligned.
    hsum = h[0:bt, :]
    for i in range(1, nw):
        hsum = hsum + h[i * bt:(i + 1) * bt, :]                    # (BT, 50)

    # Folded linear tail:  out = [x[:, :d], 1] @ Ahat + Hsum @ C
    o_ref[...] = (
        jnp.dot(xh_ref[...], a_ref[...], preferred_element_type=jnp.float32)
        + jnp.dot(hsum, c_ref[...], preferred_element_type=jnp.float32))


def pen_forward(x, params, d):
    B, M = x.shape
    n_windows = M - d
    n_features = params["rb4"].shape[0]
    f32 = jnp.float32

    BT = _pick_block(B)
    Bp = _round_up(B, BT)
    xpad = jnp.pad(x.astype(f32), ((0, Bp - B), (0, 0)))

    # Window-major sliding windows (one XLA gather, outside the kernel):
    # xw[i, b, :] = X[b, i:i+d+1]
    idx = jnp.arange(n_windows)[:, None] + jnp.arange(d + 1)[None, :]
    xw = jnp.transpose(xpad[:, idx], (1, 0, 2))                    # (N, Bp, d+1)

    # Head input with a trailing ones column (absorbs the folded constant).
    xh = jnp.concatenate([xpad[:, :d], jnp.ones((Bp, 1), f32)], axis=1)

    # phi layers 1-2 weights, transposed for right-multiplication.
    w1t = params["w1"].T.astype(f32)                 # (d+1, 100)
    b1 = params["b1"].reshape(1, -1).astype(f32)     # (1, 100)
    w2t = params["w2"].T.astype(f32)                 # (100, 50)
    b2 = params["b2"].reshape(1, -1).astype(f32)     # (1, 50)

    # Fold phi layer 3 and the whole (purely linear) rho MLP on the host in
    # float64:
    #   Yphi = Hsum @ w3.T + N*b3
    #   out  = [x[:,:d], Yphi] @ R + crho
    #        = x[:,:d] @ R[:d] + Hsum @ (w3.T @ R[d:]) + (N*b3 @ R[d:] + crho)
    def f64(a):
        return np.asarray(a, dtype=np.float64)

    w3, b3 = f64(params["w3"]), f64(params["b3"])
    r1, rb1 = f64(params["r1"]), f64(params["rb1"])
    r2, rb2 = f64(params["r2"]), f64(params["rb2"])
    r3, rb3 = f64(params["r3"]), f64(params["rb3"])
    r4, rb4 = f64(params["r4"]), f64(params["rb4"])

    R = r1.T @ r2.T @ r3.T @ r4.T                                  # (d+10, nf)
    crho = ((rb1 @ r2.T + rb2) @ r3.T + rb3) @ r4.T + rb4          # (nf,)
    const = n_windows * (b3 @ R[d:, :]) + crho                     # (nf,)
    ahat = jnp.asarray(np.vstack([R[:d, :], const[None, :]]), f32)  # (d+1, nf)
    cmat = jnp.asarray(w3.T @ R[d:, :], f32)                       # (50, nf)

    def wspec(arr):
        zeros = (0,) * arr.ndim
        return pl.BlockSpec(arr.shape, lambda b, z=zeros: z)       # resident

    out = pl.pallas_call(
        pen_kernel,
        out_shape=jax.ShapeDtypeStruct((Bp, n_features), f32),
        grid=(Bp // BT,),
        in_specs=[
            pl.BlockSpec((n_windows, BT, d + 1), lambda b: (0, b, 0)),
            pl.BlockSpec((BT, d + 1), lambda b: (b, 0)),
            wspec(w1t), wspec(b1), wspec(w2t), wspec(b2),
            wspec(ahat), wspec(cmat),
        ],
        out_specs=pl.BlockSpec((BT, n_features), lambda b: (b, 0)),
        compiler_params=pltpu.CompilerParams(
            dimension_semantics=("parallel",)),
    )(xw, xh, w1t, b1, w2t, b2, ahat, cmat)
    return out[:B]


def reference_forward(x, params, d):
    """Pure-JAX reference mirroring the PyTorch PEN.forward (no folds)."""
    B, M = x.shape
    n = M - d
    hi = jax.lax.Precision.HIGHEST
    idx = jnp.arange(n)[:, None] + jnp.arange(d + 1)[None, :]      # (N, d+1)
    xs = x[:, idx]                                                 # (B, N, d+1)
    h = jnp.maximum(jnp.dot(xs, params["w1"].T, precision=hi) + params["b1"], 0.0)
    h = jnp.maximum(jnp.dot(h, params["w2"].T, precision=hi) + params["b2"], 0.0)
    h = jnp.dot(h, params["w3"].T, precision=hi) + params["b3"]
    yphi = h.sum(axis=1)                                           # (B, 10)
    z = jnp.concatenate([x[:, :d], yphi], axis=1)                  # (B, d+10)
    z = jnp.dot(z, params["r1"].T, precision=hi) + params["rb1"]
    z = jnp.dot(z, params["r2"].T, precision=hi) + params["rb2"]
    z = jnp.dot(z, params["r3"].T, precision=hi) + params["rb3"]
    z = jnp.dot(z, params["r4"].T, precision=hi) + params["rb4"]
    return z


def init_params(key, d, n_features):
    """PyTorch-default-style uniform(+-1/sqrt(fan_in)) init, PyTorch layout."""
    ks = jax.random.split(key, 14)

    def u(k, shape, fan_in):
        bound = 1.0 / np.sqrt(fan_in)
        return jax.random.uniform(k, shape, jnp.float32, -bound, bound)

    return {
        # phi: Linear(d+1,100) -> ReLU -> Linear(100,50) -> ReLU -> Linear(50,10)
        "w1": u(ks[0], (100, d + 1), d + 1), "b1": u(ks[1], (100,), d + 1),
        "w2": u(ks[2], (50, 100), 100),      "b2": u(ks[3], (50,), 100),
        "w3": u(ks[4], (10, 50), 50),        "b3": u(ks[5], (10,), 50),
        # rho: Linear(d+10,50) -> Linear(50,50) -> Linear(50,20) -> Linear(20,nf)
        "r1": u(ks[6], (50, d + 10), d + 10), "rb1": u(ks[7], (50,), d + 10),
        "r2": u(ks[8], (50, 50), 50),         "rb2": u(ks[9], (50,), 50),
        "r3": u(ks[10], (20, 50), 50),        "rb3": u(ks[11], (20,), 50),
        "r4": u(ks[12], (n_features, 20), 20), "rb4": u(ks[13], (n_features,), 20),
    }


if __name__ == "__main__":
    d = 3             # PEN(d=3, n_features=2)
    M = 16            # sequence length (X is (B, M), M > d)
    n_features = 2

    key = jax.random.PRNGKey(0)
    kx, kp = jax.random.split(key)
    params = init_params(kp, d, n_features)

    # Primary small shape (batch=2), plus a multi-block batch to exercise the
    # grid / padding path (BT=128, two grid steps).
    for B in (2, 192):
        x = jax.random.normal(jax.random.fold_in(kx, B), (B, M), jnp.float32)
        out = jax.block_until_ready(pen_forward(x, params, d))
        ref = reference_forward(x, params, d)
        np.testing.assert_allclose(np.asarray(out), np.asarray(ref),
                                   rtol=1e-4, atol=1e-4)
    print("KERNEL_OK")
</pallas_src>

<mosaic_0001>
module attributes {stable_mosaic.version = 11 : i64} {
  func.func @pen_kernel(%arg0: i32, %arg1: memref<13x8x4xf32, #tpu.memory_space<vmem>>, %arg2: memref<8x4xf32, #tpu.memory_space<vmem>>, %arg3: memref<4x100xf32, #tpu.memory_space<vmem>>, %arg4: memref<1x100xf32, #tpu.memory_space<vmem>>, %arg5: memref<100x50xf32, #tpu.memory_space<vmem>>, %arg6: memref<1x50xf32, #tpu.memory_space<vmem>>, %arg7: memref<4x2xf32, #tpu.memory_space<vmem>>, %arg8: memref<50x2xf32, #tpu.memory_space<vmem>>, %arg9: memref<8x2xf32, #tpu.memory_space<vmem>>) attributes {dimension_semantics = [#tpu.dimension_semantics<parallel>], iteration_bounds = array<i64: 1>, scalar_prefetch = 0 : i64, scratch_operands = 0 : i64, tpu.core_type = #tpu.core_type<tc>, window_params = [{transform_indices = @transform_0, window_bounds = array<i64: 13, 8, 4>}, {transform_indices = @transform_1, window_bounds = array<i64: 8, 4>}, {pipeline_mode = #tpu.pipeline_mode<synchronous>, transform_indices = @transform_2, window_bounds = array<i64: 4, 100>}, {pipeline_mode = #tpu.pipeline_mode<synchronous>, transform_indices = @transform_3, window_bounds = array<i64: 1, 100>}, {pipeline_mode = #tpu.pipeline_mode<synchronous>, transform_indices = @transform_4, window_bounds = array<i64: 100, 50>}, {pipeline_mode = #tpu.pipeline_mode<synchronous>, transform_indices = @transform_5, window_bounds = array<i64: 1, 50>}, {pipeline_mode = #tpu.pipeline_mode<synchronous>, transform_indices = @transform_6, window_bounds = array<i64: 4, 2>}, {pipeline_mode = #tpu.pipeline_mode<synchronous>, transform_indices = @transform_7, window_bounds = array<i64: 50, 2>}, {transform_indices = @transform_8, window_bounds = array<i64: 8, 2>}]} {
    %c0 = arith.constant 0 : index
    %c0_0 = arith.constant 0 : index
    %c0_1 = arith.constant 0 : index
    %0 = vector.load %arg1[%c0, %c0_0, %c0_1] : memref<13x8x4xf32, #tpu.memory_space<vmem>>, vector<13x8x4xf32>
    %1 = vector.shape_cast %0 : vector<13x8x4xf32> to vector<104x4xf32>
    %c0_2 = arith.constant 0 : index
    %c0_3 = arith.constant 0 : index
    %2 = vector.load %arg3[%c0_2, %c0_3] : memref<4x100xf32, #tpu.memory_space<vmem>>, vector<4x100xf32>
    %cst = arith.constant dense<0.000000e+00> : vector<104x100xf32>
    %3 = tpu.matmul %1, %2, %cst {dimension_numbers = #tpu.dot_dimension_numbers<[1], [0], [0], [1], [0, 0, 1, 1], [], []>} : vector<104x4xf32>, vector<4x100xf32>, vector<104x100xf32> -> vector<104x100xf32>
    %c0_4 = arith.constant 0 : index
    %c0_5 = arith.constant 0 : index
    %4 = vector.load %arg4[%c0_4, %c0_5] : memref<1x100xf32, #tpu.memory_space<vmem>>, vector<1x100xf32>
    %5 = vector.broadcast %4 : vector<1x100xf32> to vector<104x100xf32>
    %6 = arith.addf %3, %5 : vector<104x100xf32>
    %cst_6 = arith.constant 0.000000e+00 : f32
    %7 = vector.broadcast %cst_6 : f32 to vector<104x100xf32>
    %8 = arith.maximumf %6, %7 : vector<104x100xf32>
    %c0_7 = arith.constant 0 : index
    %c0_8 = arith.constant 0 : index
    %9 = vector.load %arg5[%c0_7, %c0_8] : memref<100x50xf32, #tpu.memory_space<vmem>>, vector<100x50xf32>
    %cst_9 = arith.constant dense<0.000000e+00> : vector<104x50xf32>
    %10 = tpu.matmul %8, %9, %cst_9 {dimension_numbers = #tpu.dot_dimension_numbers<[1], [0], [0], [1], [0, 0, 1, 1], [], []>} : vector<104x100xf32>, vector<100x50xf32>, vector<104x50xf32> -> vector<104x50xf32>
    %c0_10 = arith.constant 0 : index
    %c0_11 = arith.constant 0 : index
    %11 = vector.load %arg6[%c0_10, %c0_11] : memref<1x50xf32, #tpu.memory_space<vmem>>, vector<1x50xf32>
    %12 = vector.broadcast %11 : vector<1x50xf32> to vector<104x50xf32>
    %13 = arith.addf %10, %12 : vector<104x50xf32>
    %cst_12 = arith.constant 0.000000e+00 : f32
    %14 = vector.broadcast %cst_12 : f32 to vector<104x50xf32>
    %15 = arith.maximumf %13, %14 : vector<104x50xf32>
    %16 = vector.extract_strided_slice %15 {offsets = [0, 0], sizes = [8, 50], strides = [1, 1]} : vector<104x50xf32> to vector<8x50xf32>
    %17 = vector.extract_strided_slice %15 {offsets = [8, 0], sizes = [8, 50], strides = [1, 1]} : vector<104x50xf32> to vector<8x50xf32>
    %18 = arith.addf %16, %17 : vector<8x50xf32>
    %19 = vector.extract_strided_slice %15 {offsets = [16, 0], sizes = [8, 50], strides = [1, 1]} : vector<104x50xf32> to vector<8x50xf32>
    %20 = arith.addf %18, %19 : vector<8x50xf32>
    %21 = vector.extract_strided_slice %15 {offsets = [24, 0], sizes = [8, 50], strides = [1, 1]} : vector<104x50xf32> to vector<8x50xf32>
    %22 = arith.addf %20, %21 : vector<8x50xf32>
    %23 = vector.extract_strided_slice %15 {offsets = [32, 0], sizes = [8, 50], strides = [1, 1]} : vector<104x50xf32> to vector<8x50xf32>
    %24 = arith.addf %22, %23 : vector<8x50xf32>
    %25 = vector.extract_strided_slice %15 {offsets = [40, 0], sizes = [8, 50], strides = [1, 1]} : vector<104x50xf32> to vector<8x50xf32>
    %26 = arith.addf %24, %25 : vector<8x50xf32>
    %27 = vector.extract_strided_slice %15 {offsets = [48, 0], sizes = [8, 50], strides = [1, 1]} : vector<104x50xf32> to vector<8x50xf32>
    %28 = arith.addf %26, %27 : vector<8x50xf32>
    %29 = vector.extract_strided_slice %15 {offsets = [56, 0], sizes = [8, 50], strides = [1, 1]} : vector<104x50xf32> to vector<8x50xf32>
    %30 = arith.addf %28, %29 : vector<8x50xf32>
    %31 = vector.extract_strided_slice %15 {offsets = [64, 0], sizes = [8, 50], strides = [1, 1]} : vector<104x50xf32> to vector<8x50xf32>
    %32 = arith.addf %30, %31 : vector<8x50xf32>
    %33 = vector.extract_strided_slice %15 {offsets = [72, 0], sizes = [8, 50], strides = [1, 1]} : vector<104x50xf32> to vector<8x50xf32>
    %34 = arith.addf %32, %33 : vector<8x50xf32>
    %35 = vector.extract_strided_slice %15 {offsets = [80, 0], sizes = [8, 50], strides = [1, 1]} : vector<104x50xf32> to vector<8x50xf32>
    %36 = arith.addf %34, %35 : vector<8x50xf32>
    %37 = vector.extract_strided_slice %15 {offsets = [88, 0], sizes = [8, 50], strides = [1, 1]} : vector<104x50xf32> to vector<8x50xf32>
    %38 = arith.addf %36, %37 : vector<8x50xf32>
    %39 = vector.extract_strided_slice %15 {offsets = [96, 0], sizes = [8, 50], strides = [1, 1]} : vector<104x50xf32> to vector<8x50xf32>
    %40 = arith.addf %38, %39 : vector<8x50xf32>
    %c0_13 = arith.constant 0 : index
    %c0_14 = arith.constant 0 : index
    %41 = vector.load %arg2[%c0_13, %c0_14] : memref<8x4xf32, #tpu.memory_space<vmem>>, vector<8x4xf32>
    %c0_15 = arith.constant 0 : index
    %c0_16 = arith.constant 0 : index
    %42 = vector.load %arg7[%c0_15, %c0_16] : memref<4x2xf32, #tpu.memory_space<vmem>>, vector<4x2xf32>
    %cst_17 = arith.constant dense<0.000000e+00> : vector<8x2xf32>
    %43 = tpu.matmul %41, %42, %cst_17 {dimension_numbers = #tpu.dot_dimension_numbers<[1], [0], [0], [1], [0, 0, 1, 1], [], []>} : vector<8x4xf32>, vector<4x2xf32>, vector<8x2xf32> -> vector<8x2xf32>
    %c0_18 = arith.constant 0 : index
    %c0_19 = arith.constant 0 : index
    %44 = vector.load %arg8[%c0_18, %c0_19] : memref<50x2xf32, #tpu.memory_space<vmem>>, vector<50x2xf32>
    %cst_20 = arith.constant dense<0.000000e+00> : vector<8x2xf32>
    %45 = tpu.matmul %40, %44, %cst_20 {dimension_numbers = #tpu.dot_dimension_numbers<[1], [0], [0], [1], [0, 0, 1, 1], [], []>} : vector<8x50xf32>, vector<50x2xf32>, vector<8x2xf32> -> vector<8x2xf32>
    %46 = arith.addf %43, %45 : vector<8x2xf32>
    %c0_21 = arith.constant 0 : index
    %c0_22 = arith.constant 0 : index
    %47 = vector.load %arg9[%c0_21, %c0_22] : memref<8x2xf32, #tpu.memory_space<vmem>>, vector<8x2xf32>
    tpu.vector_store %arg9[%c0_21, %c0_22], %46 {strides = array<i32>} : memref<8x2xf32, #tpu.memory_space<vmem>>, vector<8x2xf32>,
    return
  }
  func.func @transform_0(%arg0: i32) -> (i32, i32, i32) {
    %c0_i32 = arith.constant 0 : i32
    %c0_i32_0 = arith.constant 0 : i32
    %c0_i32_1 = arith.constant 0 : i32
    return %c0_i32, %arg0, %c0_i32_0 : i32, i32, i32
  }
  func.func @transform_1(%arg0: i32) -> (i32, i32) {
    %c0_i32 = arith.constant 0 : i32
    %c0_i32_0 = arith.constant 0 : i32
    return %arg0, %c0_i32 : i32, i32
  }
  func.func @transform_2(%arg0: i32) -> (i32, i32) {
    %c0_i32 = arith.constant 0 : i32
    %c0_i32_0 = arith.constant 0 : i32
    %c0_i32_1 = arith.constant 0 : i32
    return %c0_i32, %c0_i32_0 : i32, i32
  }
  func.func @transform_3(%arg0: i32) -> (i32, i32) {
    %c0_i32 = arith.constant 0 : i32
    %c0_i32_0 = arith.constant 0 : i32
    %c0_i32_1 = arith.constant 0 : i32
    return %c0_i32, %c0_i32_0 : i32, i32
  }
  func.func @transform_4(%arg0: i32) -> (i32, i32) {
    %c0_i32 = arith.constant 0 : i32
    %c0_i32_0 = arith.constant 0 : i32
    %c0_i32_1 = arith.constant 0 : i32
    return %c0_i32, %c0_i32_0 : i32, i32
  }
  func.func @transform_5(%arg0: i32) -> (i32, i32) {
    %c0_i32 = arith.constant 0 : i32
    %c0_i32_0 = arith.constant 0 : i32
    %c0_i32_1 = arith.constant 0 : i32
    return %c0_i32, %c0_i32_0 : i32, i32
  }
  func.func @transform_6(%arg0: i32) -> (i32, i32) {
    %c0_i32 = arith.constant 0 : i32
    %c0_i32_0 = arith.constant 0 : i32
    %c0_i32_1 = arith.constant 0 : i32
    return %c0_i32, %c0_i32_0 : i32, i32
  }
  func.func @transform_7(%arg0: i32) -> (i32, i32) {
    %c0_i32 = arith.constant 0 : i32
    %c0_i32_0 = arith.constant 0 : i32
    %c0_i32_1 = arith.constant 0 : i32
    return %c0_i32, %c0_i32_0 : i32, i32
  }
  func.func @transform_8(%arg0: i32) -> (i32, i32) {
    %c0_i32 = arith.constant 0 : i32
    %c0_i32_0 = arith.constant 0 : i32
    return %arg0, %c0_i32 : i32, i32
  }
}

</mosaic_0001>

<bundles_post_ra>
// kernel: tpu_custom_call.1
= control target key start
LH: loop header
LB: loop body
LE: loop exit
PB: predicated region body
PF: predicated region fallthrough
CT: control target
= control target key end

     0   :  { %vm90_vm0 = vcmask 1043456   ;;  %vm50_vm1 = vcmask 31744   ;;  %v868_v0 = vmov 0.0   ;;  %vm869_vm2 = vmmov 0   ;;  %s1147_s2 = inlined_call_operand.vmem [shape: f32[4,100], index: 2, kind: input, shape index: {}]   ;;  %s1148_s0 = inlined_call_operand.vmem [shape: f32[13,8,4], index: 0, kind: input, shape index: {}]   ;;  %s1149_s4 = inlined_call_operand.vmem [shape: f32[100,50], index: 4, kind: input, shape index: {}]   ;;  %s1150_s3 = inlined_call_operand.vmem [shape: f32[1,100], index: 3, kind: input, shape index: {}]   ;;  %s1151_s7 = inlined_call_operand.vmem [shape: f32[50,2], index: 7, kind: input, shape index: {}]   ;;  %s1152_s5 = inlined_call_operand.vmem [shape: f32[1,50], index: 5, kind: input, shape index: {}]   ;;  %s1153_s6 = inlined_call_operand.vmem [shape: f32[4,2], index: 6, kind: input, shape index: {}]   ;;  %s1154_s1 = inlined_call_operand.vmem [shape: f32[8,4], index: 1, kind: input, shape index: {}]   ;;  %s1155_s8 = inlined_call_operand.vmem [shape: f32[8,2], index: 8, kind: output, shape index: {}]  }
   0x1   :  { %708 = vmatprep.subr.mxu0 %v868_v0  ;;  %v42_v1 = vld [vmem:[%s1147_s2] sm:$0xf]  ;;  %710 = vmatprep.mubr.msk.f32.mxu0 %vm869_vm2, %v868_v0  ;;  %v870_v3 = vmov 0.0|0.0   ;;  %v30_v4 = vld [vmem:[%s1148_s0 + $0x8] sm:$0xff]  ;;  %v239_v7 = vld [vmem:[%s1149_s4 + $0x10] sm:$0xff]  ;;  %vm257_vm3 = vcmask 818176  }
   0x2   :  { %v29_v2 = vld [vmem:[%s1148_s0] sm:$0xff]  ;;  %709 = vmatpush3.msk.msra.mxu0 %vm90_vm0, %v42_v1  ;;  %836 = vmatprep.subr.bf16.mxu1 %v870_v3  ;;  %v238_v6 = vld [vmem:[%s1149_s4 + $0x8] sm:$0xff]  ;;  %v240_v8 = vld [vmem:[%s1149_s4 + $0x18] sm:$0xff]  ;;  %vm468_vm4 = vcmask 1041408   ;;  %vm464_vm5 = vcmask 408576   ;;  %vm618_vm6 = vcmask 15360  }
   0x3   :  { %711 = vmatmul.mubr.msk.f32.vlgmr.msra.gmra.mrb[0].mxu0 %vm50_vm1, %v29_v2  ;;  %775 = vmatprep.mubr.msk.f32.mxu1 %vm869_vm2, %v868_v0  ;;  %v237_v5 = vld [vmem:[%s1149_s4] sm:$0xff]  ;;  %v31_v10 = vld [vmem:[%s1148_s0 + $0x10] sm:$0xff]  ;;  %v840_v11 = vpack.c.bf16 %v240_v8, %v239_v7  ;;  %v242_v13 = vld [vmem:[%s1149_s4 + $0x28] sm:$0xff] }
   0x4   :  { %713 = vmatprep.mubr.msk.f32.mxu0 %vm869_vm2, %v868_v0  ;;  %854 = vmatprep.subr.bf16.mxu0 %v870_v3  ;;  %v837_v9 = vpack.c.bf16 %v238_v6, %v237_v5  ;;  %v241_v12 = vld [vmem:[%s1149_s4 + $0x20] sm:$0xff]  ;;  %v32_v14 = vld [vmem:[%s1148_s0 + $0x18] sm:$0xff]  ;;  %v243_v16 = vld [vmem:[%s1149_s4 + $0x30] sm:$0xff] }
   0x5   :  { %v843_v15 = vpack.c.bf16 %v242_v13, %v241_v12  ;;  %v244_v17 = vld [vmem:[%s1149_s4 + $0x38] sm:$0xff]  ;;  %v33_v18 = vld [vmem:[%s1148_s0 + $0x20] sm:$0xff]  ;;  %v246_v21 = vld [vmem:[%s1149_s4 + $0x48] sm:$0xff] }
   0x6   :  { %838 = vmatpush3.bf16.msra.mxu1 %v837_v9  ;;  %v846_v19 = vpack.c.bf16 %v244_v17, %v243_v16  ;;  %v245_v20 = vld [vmem:[%s1149_s4 + $0x40] sm:$0xff]  ;;  %v34_v22 = vld [vmem:[%s1148_s0 + $0x28] sm:$0xff]  ;;  %v35_v24 = vld [vmem:[%s1148_s0 + $0x30] sm:$0xff] }
   0x7   :  { %714 = vmatmul.mubr.msk.f32.gmra.mrb[2].mxu0 %vm50_vm1, %v30_v4  ;;  %839 = vmatprep.subr.bf16.mxu1 %v870_v3  ;;  %v849_v23 = vpack.c.bf16 %v246_v21, %v245_v20  ;;  %v36_v25 = vld [vmem:[%s1148_s0 + $0x38] sm:$0xff]  ;;  %v37_v26 = vld [vmem:[%s1148_s0 + $0x40] sm:$0xff]  ;;  %v38_v27 = vld [vmem:[%s1148_s0 + $0x48] sm:$0xff] }
   0x8   :  { %716 = vmatprep.mubr.msk.f32.mxu0 %vm869_vm2, %v868_v0  ;;  %v39_v28 = vld [vmem:[%s1148_s0 + $0x50] sm:$0xff]  ;;  %v40_v29 = vld [vmem:[%s1148_s0 + $0x58] sm:$0xff]  ;;  %v41_v30 = vld [vmem:[%s1148_s0 + $0x60] sm:$0xff] }
   0x9   :  { %v247_v31 = vld [vmem:[%s1149_s4 + $0x50] sm:$0xff]  ;;  %v248_v32 = vld [vmem:[%s1149_s4 + $0x58] sm:$0xff]  ;;  %v249_v34 = vld [vmem:[%s1149_s4 + $0x60] sm:$0xf] }
   0xa   :  { %841 = vmatpush3.bf16.msra.mxu1 %v840_v11  ;;  %v852_v33 = vpack.c.bf16 %v248_v32, %v247_v31  ;;  %v1054_v35 = vld [vmem:[%s1150_s3] ss:$0 sm:$0xff] }
   0xb   :  { %717 = vmatmul.mubr.msk.f32.gmra.mrb[4].mxu0 %vm50_vm1, %v31_v10  ;;  %842 = vmatprep.subr.bf16.mxu1 %v870_v3  ;;  %v461_v32 = vld [vmem:[%s1151_s7 + $0x20] sm:$0xff] }
   0xc   :  { %719 = vmatprep.mubr.msk.f32.mxu0 %vm869_vm2, %v868_v0 }
   0xe   :  { %844 = vmatpush3.bf16.msra.mxu1 %v843_v15 }
   0xf   :  { %720 = vmatmul.mubr.msk.f32.gmra.mrb[6].mxu0 %vm50_vm1, %v32_v14  ;;  %845 = vmatprep.subr.bf16.mxu1 %v870_v3 }
  0x10   :  { %722 = vmatprep.mubr.msk.f32.mxu0 %vm869_vm2, %v868_v0 }
  0x12   :  { %847 = vmatpush3.bf16.msra.mxu1 %v846_v19 }
  0x13   :  { %723 = vmatmul.mubr.msk.f32.gmra.mrb[8].mxu0 %vm50_vm1, %v33_v18  ;;  %848 = vmatprep.subr.bf16.mxu1 %v870_v3 }
  0x14   :  { %725 = vmatprep.mubr.msk.f32.mxu0 %vm869_vm2, %v868_v0 }
  0x16   :  { %850 = vmatpush3.bf16.msra.mxu1 %v849_v23 }
  0x17   :  { %726 = vmatmul.mubr.msk.f32.gmra.mrb[10].mxu0 %vm50_vm1, %v34_v22  ;;  %851 = vmatprep.subr.bf16.mxu1 %v870_v3 }
  0x18   :  { %728 = vmatprep.mubr.msk.f32.mxu0 %vm869_vm2, %v868_v0 }
  0x1a   :  { %853 = vmatpush3.bf16.msra.mxu1 %v852_v33  ;;  %v462_v33 = vld [vmem:[%s1151_s7 + $0x28] sm:$0xff] }
  0x1b   :  { %729 = vmatmul.mubr.msk.f32.gmra.mrb[12].mxu0 %vm50_vm1, %v35_v24  ;;  %773 = vmatprep.subr.mxu1 %v868_v0 }
  0x1c   :  { %731 = vmatprep.mubr.msk.f32.mxu0 %vm869_vm2, %v868_v0 }
  0x1e   :  { %774 = vmatpush3.msk.msra.mxu1 %vm90_vm0, %v249_v34  ;;  %v861_v34 = vpack.c.bf16 %v462_v33, %v461_v32 }
  0x1f   :  { %732 = vmatmul.mubr.msk.f32.gmra.mrb[14].mxu0 %vm50_vm1, %v36_v25 }
  0x20   :  { %734 = vmatprep.mubr.msk.f32.mxu0 %vm869_vm2, %v868_v0 }
  0x23   :  { %735 = vmatmul.mubr.msk.f32.gmra.mrb[16].mxu0 %vm50_vm1, %v37_v26  ;;  %v457_v26 = vld [vmem:[%s1151_s7] sm:$0xff] }
  0x24   :  { %737 = vmatprep.mubr.msk.f32.mxu0 %vm869_vm2, %v868_v0 }
  0x27   :  { %738 = vmatmul.mubr.msk.f32.gmra.mrb[18].mxu0 %vm50_vm1, %v38_v27  ;;  %v458_v27 = vld [vmem:[%s1151_s7 + $0x8] sm:$0xff] }
  0x28   :  { %740 = vmatprep.mubr.msk.f32.mxu0 %vm869_vm2, %v868_v0 }
  0x2b   :  { %741 = vmatmul.mubr.msk.f32.gmra.mrb[20].mxu0 %vm50_vm1, %v39_v28  ;;  %v855_v28 = vpack.c.bf16 %v458_v27, %v457_v26 }
  0x2c   :  { %743 = vmatprep.mubr.msk.f32.mxu0 %vm869_vm2, %v868_v0 }
  0x2d   :  { %856 = vmatpush3.bf16.msra.mxu0 %v855_v28 }
  0x2e   :  { %857 = vmatprep.subr.bf16.mxu0 %v870_v3 }
  0x2f   :  { %744 = vmatmul.mubr.msk.f32.gmra.mrb[22].mxu0 %vm50_vm1, %v40_v29  ;;  %v459_v29 = vld [vmem:[%s1151_s7 + $0x10] sm:$0xff] }
  0x30   :  { %746 = vmatprep.mubr.msk.f32.mxu0 %vm869_vm2, %v868_v0 }
  0x33   :  { %747 = vmatmul.mubr.msk.f32.gmra.mrb[24].mxu0 %vm50_vm1, %v41_v30  ;;  %v460_v30 = vld [vmem:[%s1151_s7 + $0x18] sm:$0xff] }
  0x34   :  { %828 = vmatprep.mubr.msk.f32.mxu0 %vm869_vm2, %v868_v0  ;;  %v858_v31 = vpack.c.bf16 %v460_v30, %v459_v29 }
  0x36   :  { %859 = vmatpush3.bf16.msra.mxu0 %v858_v31 }
  0x37   :  { %860 = vmatprep.subr.bf16.mxu0 %v870_v3  ;;  %v639_v3 = vld [vmem:[%s1152_s5] ss:$0 sm:$0xff] }
  0x3a   :  { %862 = vmatpush3.bf16.msra.mxu0 %v861_v34 }
  0x3b   :  { %826 = vmatprep.subr.mxu0 %v868_v0 }
  0xd6   :  { %v160_v36 = vpop.f32.mrb[0].mxu0 }
  0xd7   :  { %v161_v37 = vadd.f32 %v1054_v35, %v160_v36  ;;  %v712_v38 = vpop.f32.mrb[1].mxu0 }
  0xd9   :  { %v224_v39 = vmax.f32 %v161_v37, 0.0 }
  0xda   :  { %v165_v40 = vpop.f32.mrb[2].mxu0 }
  0xdb   :  { %v166_v41 = vadd.f32 %v1054_v35, %v165_v40  ;;  %v715_v42 = vpop.f32.mrb[3].mxu0  ;;  %776 = vmatmul.mubr.msk.f32.vlgmr.msra.gmra.mrb[0].mxu1 %vm257_vm3, %v224_v39 }
  0xdc   :  { %778 = vmatprep.mubr.msk.f32.mxu1 %vm869_vm2, %v868_v0 }
  0xdd   :  { %v225_v43 = vmax.f32 %v166_v41, 0.0 }
  0xde   :  { %v170_v44 = vpop.f32.mrb[4].mxu0 }
  0xdf   :  { %v171_v45 = vadd.f32 %v1054_v35, %v170_v44  ;;  %v718_v46 = vpop.f32.mrb[5].mxu0  ;;  %779 = vmatmul.mubr.msk.f32.gmra.mrb[2].mxu1 %vm257_vm3, %v225_v43 }
  0xe0   :  { %781 = vmatprep.mubr.msk.f32.mxu1 %vm869_vm2, %v868_v0 }
  0xe1   :  { %v226_v47 = vmax.f32 %v171_v45, 0.0 }
  0xe2   :  { %v175_v48 = vpop.f32.mrb[6].mxu0 }
  0xe3   :  { %v176_v49 = vadd.f32 %v1054_v35, %v175_v48  ;;  %v721_v50 = vpop.f32.mrb[7].mxu0  ;;  %782 = vmatmul.mubr.msk.f32.gmra.mrb[4].mxu1 %vm257_vm3, %v226_v47 }
  0xe4   :  { %784 = vmatprep.mubr.msk.f32.mxu1 %vm869_vm2, %v868_v0 }
  0xe5   :  { %v227_v51 = vmax.f32 %v176_v49, 0.0 }
  0xe6   :  { %v180_v52 = vpop.f32.mrb[8].mxu0 }
  0xe7   :  { %v181_v53 = vadd.f32 %v1054_v35, %v180_v52  ;;  %v724_v54 = vpop.f32.mrb[9].mxu0  ;;  %785 = vmatmul.mubr.msk.f32.gmra.mrb[6].mxu1 %vm257_vm3, %v227_v51 }
  0xe8   :  { %787 = vmatprep.mubr.msk.f32.mxu1 %vm869_vm2, %v868_v0 }
  0xe9   :  { %v228_v55 = vmax.f32 %v181_v53, 0.0 }
  0xea   :  { %v185_v56 = vpop.f32.mrb[10].mxu0 }
  0xeb   :  { %v186_v57 = vadd.f32 %v1054_v35, %v185_v56  ;;  %v727_v58 = vpop.f32.mrb[11].mxu0  ;;  %788 = vmatmul.mubr.msk.f32.gmra.mrb[8].mxu1 %vm257_vm3, %v228_v55 }
  0xec   :  { %790 = vmatprep.mubr.msk.f32.mxu1 %vm869_vm2, %v868_v0 }
  0xed   :  { %v229_v59 = vmax.f32 %v186_v57, 0.0 }
  0xee   :  { %v190_v60 = vpop.f32.mrb[12].mxu0 }
  0xef   :  { %v191_v61 = vadd.f32 %v1054_v35, %v190_v60  ;;  %v730_v62 = vpop.f32.mrb[13].mxu0  ;;  %791 = vmatmul.mubr.msk.f32.gmra.mrb[10].mxu1 %vm257_vm3, %v229_v59 }
  0xf0   :  { %793 = vmatprep.mubr.msk.f32.mxu1 %vm869_vm2, %v868_v0 }
  0xf1   :  { %v230_v63 = vmax.f32 %v191_v61, 0.0 }
  0xf2   :  { %v195_v1 = vpop.f32.mrb[14].mxu0 }
  0xf3   :  { %v196_v2 = vadd.f32 %v1054_v35, %v195_v1  ;;  %v733_v4 = vpop.f32.mrb[15].mxu0  ;;  %794 = vmatmul.mubr.msk.f32.gmra.mrb[12].mxu1 %vm257_vm3, %v230_v63 }
  0xf4   :  { %796 = vmatprep.mubr.msk.f32.mxu1 %vm869_vm2, %v868_v0 }
  0xf5   :  { %v231_v5 = vmax.f32 %v196_v2, 0.0 }
  0xf6   :  { %v200_v6 = vpop.f32.mrb[16].mxu0 }
  0xf7   :  { %v201_v7 = vadd.f32 %v1054_v35, %v200_v6  ;;  %v736_v8 = vpop.f32.mrb[17].mxu0  ;;  %797 = vmatmul.mubr.msk.f32.gmra.mrb[14].mxu1 %vm257_vm3, %v231_v5 }
  0xf8   :  { %799 = vmatprep.mubr.msk.f32.mxu1 %vm869_vm2, %v868_v0 }
  0xf9   :  { %v232_v9 = vmax.f32 %v201_v7, 0.0 }
  0xfa   :  { %v205_v10 = vpop.f32.mrb[18].mxu0 }
  0xfb   :  { %v206_v11 = vadd.f32 %v1054_v35, %v205_v10  ;;  %v739_v12 = vpop.f32.mrb[19].mxu0  ;;  %800 = vmatmul.mubr.msk.f32.gmra.mrb[16].mxu1 %vm257_vm3, %v232_v9 }
  0xfc   :  { %802 = vmatprep.mubr.msk.f32.mxu1 %vm869_vm2, %v868_v0 }
  0xfd   :  { %v233_v13 = vmax.f32 %v206_v11, 0.0 }
  0xfe   :  { %v210_v14 = vpop.f32.mrb[20].mxu0 }
  0xff   :  { %v211_v15 = vadd.f32 %v1054_v35, %v210_v14  ;;  %v742_v16 = vpop.f32.mrb[21].mxu0  ;;  %803 = vmatmul.mubr.msk.f32.gmra.mrb[18].mxu1 %vm257_vm3, %v233_v13 }
 0x100   :  { %805 = vmatprep.mubr.msk.f32.mxu1 %vm869_vm2, %v868_v0 }
 0x101   :  { %v234_v17 = vmax.f32 %v211_v15, 0.0 }
 0x102   :  { %v215_v18 = vpop.f32.mrb[22].mxu0 }
 0x103   :  { %v216_v19 = vadd.f32 %v1054_v35, %v215_v18  ;;  %v745_v20 = vpop.f32.mrb[23].mxu0  ;;  %806 = vmatmul.mubr.msk.f32.gmra.mrb[20].mxu1 %vm257_vm3, %v234_v17 }
 0x104   :  { %808 = vmatprep.mubr.msk.f32.mxu1 %vm869_vm2, %v868_v0 }
 0x105   :  { %v235_v21 = vmax.f32 %v216_v19, 0.0 }
 0x106   :  { %v220_v22 = vpop.f32.mrb[24].mxu0 }
 0x107   :  { %v221_v23 = vadd.f32 %v1054_v35, %v220_v22  ;;  %v748_v24 = vpop.f32.mrb[25].mxu0  ;;  %809 = vmatmul.mubr.msk.f32.gmra.mrb[22].mxu1 %vm257_vm3, %v235_v21  ;;  %v463_v35 = vld [vmem:[%s1151_s7 + $0x30] sm:$0x3] }
 0x108   :  { %811 = vmatprep.mubr.msk.f32.mxu1 %vm869_vm2, %v868_v0  ;;  %827 = vmatpush3.msk.msra.mxu0 %vm468_vm4, %v463_v35 }
 0x109   :  { %v236_v25 = vmax.f32 %v221_v23, 0.0  ;;  %831 = vmatprep.subr.mxu0 %v868_v0 }
 0x10b   :  { %812 = vmatmul.mubr.msk.f32.gmra.mrb[24].mxu1 %vm257_vm3, %v236_v25 }
 0x1ae   :  { %v366_v36 = vpop.f32.mrb[0].mxu1 }
 0x1af   :  { %v777_v37 = vpop.f32.mrb[1].mxu1  ;;  %v367_v38 = vadd.f32 %v639_v3, %v366_v36 }
 0x1b1   :  { %v430_v42 = vmax.f32 %v367_v38, 0.0  ;;  %v456_v38 = vld [vmem:[%s1153_s6] sm:$0xf] }
 0x1b2   :  { %v371_v39 = vpop.f32.mrb[2].mxu1 }
 0x1b3   :  { %v372_v40 = vadd.f32 %v639_v3, %v371_v39  ;;  %v780_v41 = vpop.f32.mrb[3].mxu1  ;;  %v455_v39 = vld [vmem:[%s1154_s1] sm:$0xff] }
 0x1b5   :  { %v431_v43 = vmax.f32 %v372_v40, 0.0 }
 0x1b6   :  { %v376_v44 = vpop.f32.mrb[4].mxu1 }
 0x1b7   :  { %v443_v45 = vadd.f32 %v431_v43, %v430_v42  ;;  %v377_v46 = vadd.f32 %v639_v3, %v376_v44  ;;  %v783_v47 = vpop.f32.mrb[5].mxu1 }
 0x1b9   :  { %v432_v48 = vmax.f32 %v377_v46, 0.0 }
 0x1ba   :  { %v381_v49 = vpop.f32.mrb[6].mxu1 }
 0x1bb   :  { %v444_v50 = vadd.f32 %v443_v45, %v432_v48  ;;  %v382_v51 = vadd.f32 %v639_v3, %v381_v49  ;;  %v786_v52 = vpop.f32.mrb[7].mxu1 }
 0x1bd   :  { %v433_v53 = vmax.f32 %v382_v51, 0.0 }
 0x1be   :  { %v386_v54 = vpop.f32.mrb[8].mxu1 }
 0x1bf   :  { %v445_v55 = vadd.f32 %v444_v50, %v433_v53  ;;  %v387_v56 = vadd.f32 %v639_v3, %v386_v54  ;;  %v789_v57 = vpop.f32.mrb[9].mxu1 }
 0x1c1   :  { %v434_v58 = vmax.f32 %v387_v56, 0.0 }
 0x1c2   :  { %v391_v59 = vpop.f32.mrb[10].mxu1 }
 0x1c3   :  { %v446_v60 = vadd.f32 %v445_v55, %v434_v58  ;;  %v392_v61 = vadd.f32 %v639_v3, %v391_v59  ;;  %v792_v62 = vpop.f32.mrb[11].mxu1 }
 0x1c5   :  { %v435_v63 = vmax.f32 %v392_v61, 0.0 }
 0x1c6   :  { %v396_v1 = vpop.f32.mrb[12].mxu1 }
 0x1c7   :  { %v447_v2 = vadd.f32 %v446_v60, %v435_v63  ;;  %v397_v4 = vadd.f32 %v639_v3, %v396_v1  ;;  %v795_v5 = vpop.f32.mrb[13].mxu1 }
 0x1c9   :  { %v436_v6 = vmax.f32 %v397_v4, 0.0 }
 0x1ca   :  { %v401_v7 = vpop.f32.mrb[14].mxu1 }
 0x1cb   :  { %v448_v8 = vadd.f32 %v447_v2, %v436_v6  ;;  %v402_v9 = vadd.f32 %v639_v3, %v401_v7  ;;  %v798_v10 = vpop.f32.mrb[15].mxu1 }
 0x1cd   :  { %v437_v11 = vmax.f32 %v402_v9, 0.0 }
 0x1ce   :  { %v406_v12 = vpop.f32.mrb[16].mxu1 }
 0x1cf   :  { %v449_v13 = vadd.f32 %v448_v8, %v437_v11  ;;  %v407_v14 = vadd.f32 %v639_v3, %v406_v12  ;;  %v801_v15 = vpop.f32.mrb[17].mxu1 }
 0x1d1   :  { %v438_v16 = vmax.f32 %v407_v14, 0.0 }
 0x1d2   :  { %v411_v17 = vpop.f32.mrb[18].mxu1 }
 0x1d3   :  { %v450_v18 = vadd.f32 %v449_v13, %v438_v16  ;;  %v412_v19 = vadd.f32 %v639_v3, %v411_v17  ;;  %v804_v20 = vpop.f32.mrb[19].mxu1 }
 0x1d5   :  { %v439_v21 = vmax.f32 %v412_v19, 0.0 }
 0x1d6   :  { %v416_v22 = vpop.f32.mrb[20].mxu1 }
 0x1d7   :  { %v451_v23 = vadd.f32 %v450_v18, %v439_v21  ;;  %v417_v24 = vadd.f32 %v639_v3, %v416_v22  ;;  %v807_v25 = vpop.f32.mrb[21].mxu1 }
 0x1d9   :  { %v440_v26 = vmax.f32 %v417_v24, 0.0 }
 0x1da   :  { %v421_v27 = vpop.f32.mrb[22].mxu1 }
 0x1db   :  { %v452_v28 = vadd.f32 %v451_v23, %v440_v26  ;;  %v422_v29 = vadd.f32 %v639_v3, %v421_v27  ;;  %v810_v30 = vpop.f32.mrb[23].mxu1 }
 0x1dd   :  { %v441_v31 = vmax.f32 %v422_v29, 0.0 }
 0x1de   :  { %v426_v32 = vpop.f32.mrb[24].mxu1 }
 0x1df   :  { %v453_v33 = vadd.f32 %v452_v28, %v441_v31  ;;  %v427_v34 = vadd.f32 %v639_v3, %v426_v32  ;;  %v813_v35 = vpop.f32.mrb[25].mxu1 }
 0x1e1   :  { %v442_v36 = vmax.f32 %v427_v34, 0.0 }
 0x1e3   :  { %v454_v37 = vadd.f32 %v453_v33, %v442_v36 }
 0x1e5   :  { %829 = vmatmul.mubr.msk.f32.vlgmr.msra.gmra.mrb[26].mxu0 %vm464_vm5, %v454_v37 }
 0x1e6   :  { %832 = vmatpush3.msk.msra.mxu0 %vm90_vm0, %v456_v38  ;;  %833 = vmatprep.mubr.msk.f32.mxu0 %vm869_vm2, %v868_v0 }
 0x1ed   :  { %834 = vmatmul.mubr.msk.f32.vlgmr.msra.gmra.mrb[26].mxu0 %vm50_vm1, %v455_v39 }
 0x2c0   :  { %v614_v3 = vpop.f32.mrb[26].mxu0 }
 0x2c1   :  { %619 = vst.msk [vmem:[%s1155_s8] sm:$0xff] %vm618_vm6, %v614_v3  ;;  %v835_v40 = vpop.f32.mrb[27].mxu0 }

</bundles_post_ra>
